<compile_context>
chip_gen: v7x
topology: tpu7x:2x2x1
jax: 0.10.0
libtpu: 0.0.40
codegen_flags: <defaults>
</compile_context>

<pallas_src>
import functools

import jax
import jax.numpy as jnp
from jax import lax
from jax.experimental import pallas as pl
from jax.experimental.pallas import tpu as pltpu


def _round_up(x, m):
    return ((x + m - 1) // m) * m


def _intermediate_kernel(x_ref, w_ref, b_ref, o_ref, *, approximate):
    # x_ref: (TM, H) compute dtype;  w_ref: (TN, H) (torch Linear layout, NT dot)
    # b_ref: (1, TN) f32;            o_ref: (TM, TN)
    acc = lax.dot_general(
        x_ref[...], w_ref[...],
        dimension_numbers=(((1,), (1,)), ((), ())),   # contract shared H axis
        preferred_element_type=jnp.float32)           # f32 accumulate on MXU
    acc = acc + b_ref[...].astype(jnp.float32)        # broadcast bias over rows
    if approximate:
        # tanh-form GELU: few VALU ops + 1 EUP tanh (EUP slot otherwise idle).
        y = jax.nn.gelu(acc, approximate=True)
    else:
        # Exact erf-based GELU (torch.nn.GELU() default semantics).
        y = 0.5 * acc * (1.0 + lax.erf(acc * jnp.float32(0.7071067811865476)))
    o_ref[...] = y.astype(o_ref.dtype)


def intermediate_forward(x, weight, bias, *, tm=512, tn=None,
                         compute_dtype=jnp.bfloat16,
                         approximate_gelu=False,
                         vmem_limit_bytes=None):
    """ViT Intermediate: GELU(x @ weight.T + bias).

    x: [B, S, H]; weight: [I, H] (torch nn.Linear layout); bias: [I].
    compute_dtype: MXU input dtype (default bf16; accumulation and the bias/GELU
    epilogue are always f32). Pass jnp.float32 for the exactness mode.
    """
    B, S, H = x.shape
    I = weight.shape[0]
    out_dtype = x.dtype
    M = B * S

    cbytes = jnp.dtype(compute_dtype).itemsize
    obytes = jnp.dtype(out_dtype).itemsize

    # ---- per-generation VMEM budget (v5e/v6e: 128 MiB, v7x: 64 MiB / TC) ----
    try:
        vmem_cap = pltpu.get_tpu_info().vmem_capacity_bytes
    except Exception:
        vmem_cap = 64 * 1024 * 1024                 # conservative (v7x-sized)
    if vmem_limit_bytes is None:
        vmem_limit_bytes = min(int(vmem_cap * 0.75), 96 * 1024 * 1024)
    budget = int(vmem_limit_bytes * 0.85)           # headroom for compiler scratch

    # ---- tile selection ------------------------------------------------------
    tm = max(8, min(tm, _round_up(M, 8)))           # sublane multiple
    if tn is None:
        tn = _round_up(I, 128)                      # full width: W resident,
                                                    # x/W/out each hit HBM once
    else:
        tn = min(_round_up(tn, 128), _round_up(I, 128))

    # Megacore: ensure >= 2 parallel grid steps when all of M fits in one tile.
    if pl.cdiv(M, tm) < 2 and tn >= 256:
        tn = _round_up(tn // 2, 128)

    def _fits(tm_, tn_):
        w_bufs = 1 if (pl.cdiv(I, tn_) == 1 and hasattr(pl, "Buffered")) else 2
        need = (2 * tm_ * H * cbytes                # x, double-buffered
                + w_bufs * tn_ * H * cbytes         # weight (1x when resident)
                + 2 * tn_ * 4                       # bias
                + 2 * tm_ * tn_ * obytes)           # out, double-buffered
        return need <= budget

    while not _fits(tm, tn):
        if tm > 128:
            tm = max(128, _round_up(tm // 2, 8))
        elif tn > 512:
            tn = max(512, _round_up(tn // 2, 128))
        elif tm > 8:
            tm = max(8, _round_up(tm // 2, 8))
        elif tn > 128:
            tn = max(128, _round_up(tn // 2, 128))
        else:
            break
    # TODO(synk): for very large hidden sizes add a third "arbitrary" grid axis
    # over H with an f32 VMEM accumulator (K-tiled path); full-H blocks suffice
    # for ViT-sized H.

    n_n = pl.cdiv(I, tn)
    n_m = pl.cdiv(M, tm)
    single_buffer_w = (n_n == 1) and hasattr(pl, "Buffered")

    # No jnp.pad / output slice: ragged edge blocks are masked by Pallas; padded
    # garbage only reaches rows/cols that are never stored or read back.
    x2d = x.reshape(M, H).astype(compute_dtype)
    w = weight.astype(compute_dtype)                # keep [I, H]; NT dot, no transpose
    b2d = bias.astype(jnp.float32).reshape(1, I)

    kernel = functools.partial(_intermediate_kernel, approximate=approximate_gelu)

    def _run(use_single_buffer_w):
        if use_single_buffer_w:
            w_spec = pl.BlockSpec((tn, H), lambda j, i: (j, 0),
                                  pipeline_mode=pl.Buffered(1))
        else:
            w_spec = pl.BlockSpec((tn, H), lambda j, i: (j, 0))
        return pl.pallas_call(
            kernel,
            out_shape=jax.ShapeDtypeStruct((M, I), out_dtype),
            grid_spec=pltpu.PrefetchScalarGridSpec(
                num_scalar_prefetch=0,
                grid=(n_n, n_m),                      # N outer, M inner: W reused
                in_specs=[
                    pl.BlockSpec((tm, H), lambda j, i: (i, 0)),   # x tile (streams)
                    w_spec,                                       # weight [I, H]
                    pl.BlockSpec((1, tn), lambda j, i: (0, j)),   # bias slice
                ],
                out_specs=pl.BlockSpec((tm, tn), lambda j, i: (i, j)),
            ),
            compiler_params=pltpu.CompilerParams(
                dimension_semantics=("parallel", "parallel"),
                vmem_limit_bytes=vmem_limit_bytes,
            ),
        )(x2d, w, b2d)

    if single_buffer_w:
        try:
            out2d = _run(True)
        except Exception:
            out2d = _run(False)      # fall back to default double buffering
    else:
        out2d = _run(False)

    return out2d.reshape(B, S, I)


if __name__ == "__main__":
    # config: hidden_size=32, intermediate_size=128; batch=2, seq=8
    B, S, H, I = 2, 8, 32, 128
    key = jax.random.PRNGKey(0)
    kx, kw, kb = jax.random.split(key, 3)
    x = jax.random.normal(kx, (B, S, H), dtype=jnp.float32)
    # Deterministic synthetic parameters (not a checkpoint load)
    weight = jax.random.normal(kw, (I, H), dtype=jnp.float32) * 0.02
    bias = jax.random.normal(kb, (I,), dtype=jnp.float32) * 0.02

    pre = jnp.einsum("bsh,ih->bsi", x, weight) + bias
    ref_exact = 0.5 * pre * (1.0 + lax.erf(pre * 0.7071067811865476))

    # Default fast path: bf16 MXU inputs, f32 accumulate, exact-erf f32 epilogue.
    out = jax.block_until_ready(intermediate_forward(x, weight, bias))
    assert out.shape == (B, S, I)
    assert jnp.allclose(out, ref_exact, atol=2e-2, rtol=2e-2), "bf16 path mismatch"

    # Opt-in exactness mode: f32 MXU inputs must match the reference tightly.
    out_f32 = jax.block_until_ready(
        intermediate_forward(x, weight, bias, compute_dtype=jnp.float32))
    assert jnp.allclose(out_f32, ref_exact, atol=1e-5, rtol=1e-5), "f32 path mismatch"

    # tanh-approximate GELU flag (cheaper EUP epilogue; ~1e-3 off exact erf).
    ref_tanh = jax.nn.gelu(pre, approximate=True)
    out_tanh = jax.block_until_ready(
        intermediate_forward(x, weight, bias, compute_dtype=jnp.float32,
                             approximate_gelu=True))
    assert jnp.allclose(out_tanh, ref_tanh, atol=1e-5, rtol=1e-5), "tanh path mismatch"

    print("KERNEL_OK")
</pallas_src>

<mosaic_0001>
module attributes {stable_mosaic.version = 11 : i64} {
  func.func @_intermediate_kernel(%arg0: i32, %arg1: i32, %arg2: memref<16x32xbf16, #tpu.memory_space<vmem>>, %arg3: memref<128x32xbf16, #tpu.memory_space<vmem>>, %arg4: memref<1x128xf32, #tpu.memory_space<vmem>>, %arg5: memref<16x128xf32, #tpu.memory_space<vmem>>) attributes {dimension_semantics = [#tpu.dimension_semantics<parallel>, #tpu.dimension_semantics<parallel>], iteration_bounds = array<i64: 1, 1>, scalar_prefetch = 0 : i64, scratch_operands = 0 : i64, tpu.core_type = #tpu.core_type<tc>, window_params = [{transform_indices = @transform_0, window_bounds = array<i64: 16, 32>}, {pipeline_mode = #tpu.pipeline_mode<synchronous>, transform_indices = @transform_1, window_bounds = array<i64: 128, 32>}, {transform_indices = @transform_2, window_bounds = array<i64: 1, 128>}, {transform_indices = @transform_3, window_bounds = array<i64: 16, 128>}]} {
    %c0 = arith.constant 0 : index
    %c0_0 = arith.constant 0 : index
    %0 = vector.load %arg2[%c0, %c0_0] : memref<16x32xbf16, #tpu.memory_space<vmem>>, vector<16x32xbf16>
    %c0_1 = arith.constant 0 : index
    %c0_2 = arith.constant 0 : index
    %1 = vector.load %arg3[%c0_1, %c0_2] : memref<128x32xbf16, #tpu.memory_space<vmem>>, vector<128x32xbf16>
    %cst = arith.constant dense<0.000000e+00> : vector<16x128xf32>
    %2 = tpu.matmul %0, %1, %cst {dimension_numbers = #tpu.dot_dimension_numbers<[1], [1], [0], [0], [0, 0, 1, 0], [], []>} : vector<16x32xbf16>, vector<128x32xbf16>, vector<16x128xf32> -> vector<16x128xf32>
    %c0_3 = arith.constant 0 : index
    %c0_4 = arith.constant 0 : index
    %3 = vector.load %arg4[%c0_3, %c0_4] : memref<1x128xf32, #tpu.memory_space<vmem>>, vector<1x128xf32>
    %4 = vector.broadcast %3 : vector<1x128xf32> to vector<16x128xf32>
    %5 = arith.addf %2, %4 : vector<16x128xf32>
    %cst_5 = arith.constant 5.000000e-01 : f32
    %6 = vector.broadcast %cst_5 : f32 to vector<16x128xf32>
    %7 = arith.mulf %6, %5 : vector<16x128xf32>
    %cst_6 = arith.constant 0.707106769 : f32
    %8 = vector.broadcast %cst_6 : f32 to vector<16x128xf32>
    %9 = arith.mulf %5, %8 : vector<16x128xf32>
    %10 = math.erf %9 : vector<16x128xf32>
    %cst_7 = arith.constant 1.000000e+00 : f32
    %11 = vector.broadcast %cst_7 : f32 to vector<16x128xf32>
    %12 = arith.addf %11, %10 : vector<16x128xf32>
    %13 = arith.mulf %7, %12 : vector<16x128xf32>
    %c0_8 = arith.constant 0 : index
    %c0_9 = arith.constant 0 : index
    %14 = vector.load %arg5[%c0_8, %c0_9] : memref<16x128xf32, #tpu.memory_space<vmem>>, vector<16x128xf32>
    tpu.vector_store %arg5[%c0_8, %c0_9], %13 {strides = array<i32>} : memref<16x128xf32, #tpu.memory_space<vmem>>, vector<16x128xf32>,
    return
  }
  func.func @transform_0(%arg0: i32, %arg1: i32) -> (i32, i32) {
    %c0_i32 = arith.constant 0 : i32
    %c0_i32_0 = arith.constant 0 : i32
    return %arg1, %c0_i32 : i32, i32
  }
  func.func @transform_1(%arg0: i32, %arg1: i32) -> (i32, i32) {
    %c0_i32 = arith.constant 0 : i32
    %c0_i32_0 = arith.constant 0 : i32
    return %arg0, %c0_i32 : i32, i32
  }
  func.func @transform_2(%arg0: i32, %arg1: i32) -> (i32, i32) {
    %c0_i32 = arith.constant 0 : i32
    %c0_i32_0 = arith.constant 0 : i32
    return %c0_i32, %arg0 : i32, i32
  }
  func.func @transform_3(%arg0: i32, %arg1: i32) -> (i32, i32) {
    %c0_i32 = arith.constant 0 : i32
    return %arg1, %arg0 : i32, i32
  }
}

module attributes {stable_mosaic.version = 11 : i64} {
  func.func @_intermediate_kernel(%arg0: i32, %arg1: i32, %arg2: memref<16x32xbf16, #tpu.memory_space<vmem>>, %arg3: memref<128x32xbf16, #tpu.memory_space<vmem>>, %arg4: memref<1x128xf32, #tpu.memory_space<vmem>>, %arg5: memref<16x128xf32, #tpu.memory_space<vmem>>) attributes {dimension_semantics = [#tpu.dimension_semantics<parallel>, #tpu.dimension_semantics<parallel>], iteration_bounds = array<i64: 1, 1>, scalar_prefetch = 0 : i64, scratch_operands = 0 : i64, tpu.core_type = #tpu.core_type<tc>, window_params = [{transform_indices = @transform_0, window_bounds = array<i64: 16, 32>}, {transform_indices = @transform_1, window_bounds = array<i64: 128, 32>}, {transform_indices = @transform_2, window_bounds = array<i64: 1, 128>}, {transform_indices = @transform_3, window_bounds = array<i64: 16, 128>}]} {
    %c0 = arith.constant 0 : index
    %c0_0 = arith.constant 0 : index
    %0 = vector.load %arg2[%c0, %c0_0] : memref<16x32xbf16, #tpu.memory_space<vmem>>, vector<16x32xbf16>
    %c0_1 = arith.constant 0 : index
    %c0_2 = arith.constant 0 : index
    %1 = vector.load %arg3[%c0_1, %c0_2] : memref<128x32xbf16, #tpu.memory_space<vmem>>, vector<128x32xbf16>
    %cst = arith.constant dense<0.000000e+00> : vector<16x128xf32>
    %2 = tpu.matmul %0, %1, %cst {dimension_numbers = #tpu.dot_dimension_numbers<[1], [1], [0], [0], [0, 0, 1, 0], [], []>} : vector<16x32xbf16>, vector<128x32xbf16>, vector<16x128xf32> -> vector<16x128xf32>
    %c0_3 = arith.constant 0 : index
    %c0_4 = arith.constant 0 : index
    %3 = vector.load %arg4[%c0_3, %c0_4] : memref<1x128xf32, #tpu.memory_space<vmem>>, vector<1x128xf32>
    %4 = vector.broadcast %3 : vector<1x128xf32> to vector<16x128xf32>
    %5 = arith.addf %2, %4 : vector<16x128xf32>
    %cst_5 = arith.constant 5.000000e-01 : f32
    %6 = vector.broadcast %cst_5 : f32 to vector<16x128xf32>
    %7 = arith.mulf %6, %5 : vector<16x128xf32>
    %cst_6 = arith.constant 0.707106769 : f32
    %8 = vector.broadcast %cst_6 : f32 to vector<16x128xf32>
    %9 = arith.mulf %5, %8 : vector<16x128xf32>
    %10 = math.erf %9 : vector<16x128xf32>
    %cst_7 = arith.constant 1.000000e+00 : f32
    %11 = vector.broadcast %cst_7 : f32 to vector<16x128xf32>
    %12 = arith.addf %11, %10 : vector<16x128xf32>
    %13 = arith.mulf %7, %12 : vector<16x128xf32>
    %c0_8 = arith.constant 0 : index
    %c0_9 = arith.constant 0 : index
    %14 = vector.load %arg5[%c0_8, %c0_9] : memref<16x128xf32, #tpu.memory_space<vmem>>, vector<16x128xf32>
    tpu.vector_store %arg5[%c0_8, %c0_9], %13 {strides = array<i32>} : memref<16x128xf32, #tpu.memory_space<vmem>>, vector<16x128xf32>,
    return
  }
  func.func @transform_0(%arg0: i32, %arg1: i32) -> (i32, i32) {
    %c0_i32 = arith.constant 0 : i32
    %c0_i32_0 = arith.constant 0 : i32
    return %arg1, %c0_i32 : i32, i32
  }
  func.func @transform_1(%arg0: i32, %arg1: i32) -> (i32, i32) {
    %c0_i32 = arith.constant 0 : i32
    %c0_i32_0 = arith.constant 0 : i32
    return %arg0, %c0_i32 : i32, i32
  }
  func.func @transform_2(%arg0: i32, %arg1: i32) -> (i32, i32) {
    %c0_i32 = arith.constant 0 : i32
    %c0_i32_0 = arith.constant 0 : i32
    return %c0_i32, %arg0 : i32, i32
  }
  func.func @transform_3(%arg0: i32, %arg1: i32) -> (i32, i32) {
    %c0_i32 = arith.constant 0 : i32
    return %arg1, %arg0 : i32, i32
  }
}

</mosaic_0001>

<bundles_post_ra>
// kernel: tpu_custom_call.1
= control target key start
LH: loop header
LB: loop body
LE: loop exit
PB: predicated region body
PF: predicated region fallthrough
CT: control target
= control target key end

     0   :  { %v265_v1 = vmov 0.0   ;;  %vm86_vm0 = vcmask 261120   ;;  %vm266_vm1 = vmmov 0   ;;  %s341_s0 = inlined_call_operand.vmem [shape: bf16[16,32], index: 0, kind: input, shape index: {}]   ;;  %s342_s1 = inlined_call_operand.vmem [shape: bf16[128,32], index: 1, kind: input, shape index: {}]   ;;  %s343_s2 = inlined_call_operand.vmem [shape: f32[1,128], index: 2, kind: input, shape index: {}]   ;;  %s344_s3 = inlined_call_operand.hbm [shape: f32[16,128], index: 3, kind: output, shape index: {}]  }
   0x1   :  { %v228_v0 = vld [vmem:[%s342_s1] sm:$0xff]   ;;  %203 = vmatprep.subr.bf16.mxu0 %v265_v1  ;;  %v229_v3 = vld [vmem:[%s342_s1 + $0x8] sm:$0xff]   ;;  %219 = vmatprep.mubr.msk.bf16.mxu0 %vm266_vm1, %v265_v1 }
   0x2   :  { %v91_v2 = vsel %vm86_vm0, %v228_v0, 0  ;;  %v94_v4 = vsel %vm86_vm0, %v229_v3, 0 }
   0x3   :  { %204 = vmatpush3.bf16.xpose.msra.mxu0 %v91_v2 }
   0x4   :  { %205 = vmatprep.subr.bf16.mxu0 %v265_v1 }
   0x5   :  { %8 = vsyncpa [#allocation3], 0  ;;  %v230_v5 = vld [vmem:[%s342_s1 + $0x10] sm:$0xff]   ;;  %v231_v7 = vld [vmem:[%s342_s1 + $0x18] sm:$0xff]  }
   0x6   :  { %v97_v6 = vsel %vm86_vm0, %v230_v5, 0  ;;  %v100_v8 = vsel %vm86_vm0, %v231_v7, 0  ;;  %v232_v9 = vld [vmem:[%s342_s1 + $0x20] sm:$0xff]   ;;  %v233_v11 = vld [vmem:[%s342_s1 + $0x28] sm:$0xff]   ;;  %v234_v13 = vld [vmem:[%s342_s1 + $0x30] sm:$0xff]  }
   0x7   :  { %v103_v10 = vsel %vm86_vm0, %v232_v9, 0  ;;  %v106_v12 = vsel %vm86_vm0, %v233_v11, 0  ;;  %v109_v14 = vsel %vm86_vm0, %v234_v13, 0  ;;  %v235_v15 = vld [vmem:[%s342_s1 + $0x38] sm:$0xff]   ;;  %v236_v17 = vld [vmem:[%s341_s0] sm:$0xff]   ;;  %s267_s0 = smov [#allocation2]  }
   0x8   :  { %v112_v16 = vsel %vm86_vm0, %v235_v15, 0  ;;  %v183_v18 = vld [vmem:[%s343_s2] ss:$0 sm:$0xff]  ;;  %s172_s1 = sshll.u32 %s267_s0, 4  ;;  %s173_s1 = int_to_ptr.vmem [resolvable:$true] %s172_s1 }
   0x9   :  { %s241_s2 = scalar_lea.vmem %s173_s1, 256  ;;  %p246_p1 = scmp.lt.s32.totalorder %s173_s1, %s173_s1 }
   0xa   :  { %p242_p0 = scmp.ne.s32.totalorder %s173_s1, %s241_s2  ;;  %p247_p2 = scmp.lt.s32.totalorder %s241_s2, %s241_s2 }
   0xb   :  { %206 = vmatpush3.bf16.xpose.msra.mxu0 %v94_v4 }
   0xc   :  { %207 = vmatprep.subr.bf16.mxu0 %v265_v1  ;;  %p248_p3 = por %p247_p2, %p246_p1 }
   0xe   :  { %p249_p4 = pnand %p248_p3, %p242_p0 }
  0x13   :  { %208 = vmatpush3.bf16.xpose.msra.mxu0 %v97_v6 }
  0x14   :  { %209 = vmatprep.subr.bf16.mxu0 %v265_v1 }
  0x1b   :  { %210 = vmatpush3.bf16.xpose.msra.mxu0 %v100_v8 }
  0x1c   :  { %211 = vmatprep.subr.bf16.mxu0 %v265_v1 }
  0x23   :  { %212 = vmatpush3.bf16.xpose.msra.mxu0 %v103_v10 }
  0x24   :  { %213 = vmatprep.subr.bf16.mxu0 %v265_v1 }
  0x2b   :  { %214 = vmatpush3.bf16.xpose.msra.mxu0 %v106_v12 }
  0x2c   :  { %215 = vmatprep.subr.bf16.mxu0 %v265_v1 }
  0x33   :  { %216 = vmatpush3.bf16.xpose.msra.mxu0 %v109_v14 }
  0x34   :  { %217 = vmatprep.subr.bf16.mxu0 %v265_v1 }
  0x3b   :  { %218 = vmatpush3.bf16.xpose.msra.mxu0 %v112_v16 }
  0x42   :  { %220 = vmatmul.mubr.msk.bf16.vlgmr.msra.gmra.mrb[0].mxu0 %vm86_vm0, %v236_v17 }
 0x115   :  { %v148_v19 = vpop.f32.mrb[0].mxu0 }
 0x116   :  { %v149_v20 = vadd.f32 %v183_v18, %v148_v19  ;;  %v221_v21 = vpop.f32.mrb[1].mxu0 }
 0x117   :  { %v151_v22 = vpop.f32.mrb[2].mxu0 }
 0x118   :  { %v157_v23 = vmul.f32 0.70710677, %v149_v20  ;;  %v152_v24 = vadd.f32 %v183_v18, %v151_v22  ;;  %v222_v25 = vpop.f32.mrb[3].mxu0  ;;  %v155_v28 = vmul.f32 0.5, %v149_v20 }
 0x11a   :  { %237 = verf.f32 %v157_v23  ;;  %v158_v26 = vmul.f32 0.70710677, %v152_v24  ;;  %v156_v32 = vmul.f32 0.5, %v152_v24 }
 0x11c   :  { %239 = verf.f32 %v158_v26 }
 0x124   :  { %v238_v27 = vpop.eup %237 }
 0x125   :  { %v161_v29 = vadd.f32 1.0, %v238_v27 }
 0x126   :  { %v240_v30 = vpop.eup %239 }
 0x127   :  { %v163_v31 = vmul.f32 %v161_v29, %v155_v28  ;;  %v162_v33 = vadd.f32 1.0, %v240_v30 }
 0x129   :  { %165 = vst [vmem:[#allocation2] sm:$0xff] %v163_v31  ;;  %v164_v34 = vmul.f32 %v162_v33, %v156_v32 }
 0x12b   :  { %166 = vst [vmem:[#allocation2 + $0x8] sm:$0xff] %v164_v34 }
 0x12c   :  { %252 = shalt.err (!%p249_p4)
}
 0x12d   :  { %s253_s7 = scalar_lea.hbm %s344_s3, 256 }
 0x12e   :  { %p254_p5 = scmp.ne.s32.totalorder %s344_s3, %s253_s7  ;;  %p257_p6 = scmp.lt.u32.totalorder %s253_s7, %s344_s3 }
 0x130   :  { %p259_p7 = pnand %p257_p6, %p254_p5 }
 0x132   :  { %262 = shalt.err (!%p259_p7)
}
 0x133   :  { %s268_s12 = smov 128   ;;  %s269_s13 = smov 8  }
 0x134   :  { %178 = dma.vmem_to_hbm [thread:$0]  %s173_s1, 256, %s344_s3, [#allocation3], %s268_s12, %s268_s12, %s269_s13  }
 0x135   :  { %263 = dma.done.wait [#allocation3], 256  }
 0x136   :  { %264 = vsyncadd [#allocation3], 4294967040 }
 0x137   :  { %182 = vsyncpa [#allocation3], 1 }

// kernel: tpu_custom_call.1
= control target key start
LH: loop header
LB: loop body
LE: loop exit
PB: predicated region body
PF: predicated region fallthrough
CT: control target
= control target key end

     0   :  { %v265_v1 = vmov 0.0   ;;  %vm86_vm0 = vcmask 261120   ;;  %vm266_vm1 = vmmov 0   ;;  %s341_s0 = inlined_call_operand.vmem [shape: bf16[16,32], index: 0, kind: input, shape index: {}]   ;;  %s342_s1 = inlined_call_operand.vmem [shape: bf16[128,32], index: 1, kind: input, shape index: {}]   ;;  %s343_s2 = inlined_call_operand.vmem [shape: f32[1,128], index: 2, kind: input, shape index: {}]   ;;  %s344_s3 = inlined_call_operand.hbm [shape: f32[16,128], index: 3, kind: output, shape index: {}]  }
   0x1   :  { %v228_v0 = vld [vmem:[%s342_s1] sm:$0xff]   ;;  %203 = vmatprep.subr.bf16.mxu0 %v265_v1  ;;  %v229_v3 = vld [vmem:[%s342_s1 + $0x8] sm:$0xff]   ;;  %219 = vmatprep.mubr.msk.bf16.mxu0 %vm266_vm1, %v265_v1 }
   0x2   :  { %v91_v2 = vsel %vm86_vm0, %v228_v0, 0  ;;  %v94_v4 = vsel %vm86_vm0, %v229_v3, 0 }
   0x3   :  { %204 = vmatpush3.bf16.xpose.msra.mxu0 %v91_v2 }
   0x4   :  { %205 = vmatprep.subr.bf16.mxu0 %v265_v1 }
   0x5   :  { %8 = vsyncpa [#allocation3], 0  ;;  %v230_v5 = vld [vmem:[%s342_s1 + $0x10] sm:$0xff]   ;;  %v231_v7 = vld [vmem:[%s342_s1 + $0x18] sm:$0xff]  }
   0x6   :  { %v97_v6 = vsel %vm86_vm0, %v230_v5, 0  ;;  %v100_v8 = vsel %vm86_vm0, %v231_v7, 0  ;;  %v232_v9 = vld [vmem:[%s342_s1 + $0x20] sm:$0xff]   ;;  %v233_v11 = vld [vmem:[%s342_s1 + $0x28] sm:$0xff]   ;;  %v234_v13 = vld [vmem:[%s342_s1 + $0x30] sm:$0xff]  }
   0x7   :  { %v103_v10 = vsel %vm86_vm0, %v232_v9, 0  ;;  %v106_v12 = vsel %vm86_vm0, %v233_v11, 0  ;;  %v109_v14 = vsel %vm86_vm0, %v234_v13, 0  ;;  %v235_v15 = vld [vmem:[%s342_s1 + $0x38] sm:$0xff]   ;;  %v236_v17 = vld [vmem:[%s341_s0] sm:$0xff]   ;;  %s267_s0 = smov [#allocation2]  }
   0x8   :  { %v112_v16 = vsel %vm86_vm0, %v235_v15, 0  ;;  %v183_v18 = vld [vmem:[%s343_s2] ss:$0 sm:$0xff]  ;;  %s172_s1 = sshll.u32 %s267_s0, 4  ;;  %s173_s1 = int_to_ptr.vmem [resolvable:$true] %s172_s1 }
   0x9   :  { %s241_s2 = scalar_lea.vmem %s173_s1, 256  ;;  %p246_p1 = scmp.lt.s32.totalorder %s173_s1, %s173_s1 }
   0xa   :  { %p242_p0 = scmp.ne.s32.totalorder %s173_s1, %s241_s2  ;;  %p247_p2 = scmp.lt.s32.totalorder %s241_s2, %s241_s2 }
   0xb   :  { %206 = vmatpush3.bf16.xpose.msra.mxu0 %v94_v4 }
   0xc   :  { %207 = vmatprep.subr.bf16.mxu0 %v265_v1  ;;  %p248_p3 = por %p247_p2, %p246_p1 }
   0xe   :  { %p249_p4 = pnand %p248_p3, %p242_p0 }
  0x13   :  { %208 = vmatpush3.bf16.xpose.msra.mxu0 %v97_v6 }
  0x14   :  { %209 = vmatprep.subr.bf16.mxu0 %v265_v1 }
  0x1b   :  { %210 = vmatpush3.bf16.xpose.msra.mxu0 %v100_v8 }
  0x1c   :  { %211 = vmatprep.subr.bf16.mxu0 %v265_v1 }
  0x23   :  { %212 = vmatpush3.bf16.xpose.msra.mxu0 %v103_v10 }
  0x24   :  { %213 = vmatprep.subr.bf16.mxu0 %v265_v1 }
  0x2b   :  { %214 = vmatpush3.bf16.xpose.msra.mxu0 %v106_v12 }
  0x2c   :  { %215 = vmatprep.subr.bf16.mxu0 %v265_v1 }
  0x33   :  { %216 = vmatpush3.bf16.xpose.msra.mxu0 %v109_v14 }
  0x34   :  { %217 = vmatprep.subr.bf16.mxu0 %v265_v1 }
  0x3b   :  { %218 = vmatpush3.bf16.xpose.msra.mxu0 %v112_v16 }
  0x42   :  { %220 = vmatmul.mubr.msk.bf16.vlgmr.msra.gmra.mrb[0].mxu0 %vm86_vm0, %v236_v17 }
 0x115   :  { %v148_v19 = vpop.f32.mrb[0].mxu0 }
 0x116   :  { %v149_v20 = vadd.f32 %v183_v18, %v148_v19  ;;  %v221_v21 = vpop.f32.mrb[1].mxu0 }
 0x117   :  { %v151_v22 = vpop.f32.mrb[2].mxu0 }
 0x118   :  { %v157_v23 = vmul.f32 0.70710677, %v149_v20  ;;  %v152_v24 = vadd.f32 %v183_v18, %v151_v22  ;;  %v222_v25 = vpop.f32.mrb[3].mxu0  ;;  %v155_v28 = vmul.f32 0.5, %v149_v20 }
 0x11a   :  { %237 = verf.f32 %v157_v23  ;;  %v158_v26 = vmul.f32 0.70710677, %v152_v24  ;;  %v156_v32 = vmul.f32 0.5, %v152_v24 }
 0x11c   :  { %239 = verf.f32 %v158_v26 }
 0x124   :  { %v238_v27 = vpop.eup %237 }
 0x125   :  { %v161_v29 = vadd.f32 1.0, %v238_v27 }
 0x126   :  { %v240_v30 = vpop.eup %239 }
 0x127   :  { %v163_v31 = vmul.f32 %v161_v29, %v155_v28  ;;  %v162_v33 = vadd.f32 1.0, %v240_v30 }
 0x129   :  { %165 = vst [vmem:[#allocation2] sm:$0xff] %v163_v31  ;;  %v164_v34 = vmul.f32 %v162_v33, %v156_v32 }
 0x12b   :  { %166 = vst [vmem:[#allocation2 + $0x8] sm:$0xff] %v164_v34 }
 0x12c   :  { %252 = shalt.err (!%p249_p4)
}
 0x12d   :  { %s253_s7 = scalar_lea.hbm %s344_s3, 256 }
 0x12e   :  { %p254_p5 = scmp.ne.s32.totalorder %s344_s3, %s253_s7  ;;  %p257_p6 = scmp.lt.u32.totalorder %s253_s7, %s344_s3 }
 0x130   :  { %p259_p7 = pnand %p257_p6, %p254_p5 }
 0x132   :  { %262 = shalt.err (!%p259_p7)
}
 0x133   :  { %s268_s12 = smov 128   ;;  %s269_s13 = smov 8  }
 0x134   :  { %178 = dma.vmem_to_hbm [thread:$0]  %s173_s1, 256, %s344_s3, [#allocation3], %s268_s12, %s268_s12, %s269_s13  }
 0x135   :  { %263 = dma.done.wait [#allocation3], 256  }
 0x136   :  { %264 = vsyncadd [#allocation3], 4294967040 }
 0x137   :  { %182 = vsyncpa [#allocation3], 1 }

</bundles_post_ra>
